<compile_context>
chip_gen: v7x
topology: tpu7x:2x2x1
jax: 0.10.0
libtpu: 0.0.40
codegen_flags: <defaults>
</compile_context>

<pallas_src>
import functools

import jax
import jax.numpy as jnp
from jax.experimental import pallas as pl
from jax.experimental.pallas import tpu as pltpu

SUBLANE = 8  # f32 sublane height

_TRANSCENDENTAL_ACTS = ("sigmoid", "tanh", "gelu", "softplus")


def _round_up(n, m):
    return ((n + m - 1) // m) * m


def _act(v, activation):
    if activation == "relu":
        return jnp.maximum(v, 0.0)
    if activation == "sigmoid":
        return jax.nn.sigmoid(v)
    if activation == "tanh":
        return jnp.tanh(v)
    if activation == "gelu":
        return jax.nn.gelu(v)
    if activation == "softplus":
        return jax.nn.softplus(v)
    return v  # 'none'


# ----------------------------- Pallas kernel --------------------------------
def _mlp_kernel(x_ref, w1_ref, b1_ref, w2_ref, b2_ref, w3_ref, b3_ref, o_ref,
                *, activation):
    """Fused 3-layer MLP on one (bt, in_dim) batch tile.

    x is loaded as f32 and cast to bf16 in-kernel; bf16 operands feed the MXU
    with f32 accumulation (preferred_element_type); bias add + activation run
    in f32 on the VPU; intermediates are cast back to bf16 for the next
    matmul.  Dropout is identity (inference); final layer has no activation.
    """
    x = x_ref[...].astype(jnp.bfloat16)                       # (bt, 16)

    h = jnp.dot(x, w1_ref[...], preferred_element_type=jnp.float32)
    h = _act(h + b1_ref[...], activation)                     # (bt, 32) f32

    h = jnp.dot(h.astype(w2_ref.dtype), w2_ref[...],
                preferred_element_type=jnp.float32)
    h = _act(h + b2_ref[...], activation)                     # (bt, 32) f32

    out = jnp.dot(h.astype(w3_ref.dtype), w3_ref[...],
                  preferred_element_type=jnp.float32)
    o_ref[...] = (out + b3_ref[...]).astype(o_ref.dtype)      # (bt, 8) f32

    # TODO(synk): training-mode Dropout (pltpu.prng_seed + prng_random_bits
    # mask/scale) and BatchNorm1d are not implemented; inference semantics
    # (identity) are used, matching the eval-mode torch module.


# ------------------------------ Wrapper --------------------------------------
def _pick_batch_tile(batch):
    """Batch tile: large (amortize per-step overhead) but keep >= 2 grid steps
    when the batch allows, so v7x's two TensorCores both get work.  VMEM is a
    non-issue here (bt=1024 double-buffered x+out is < 0.2 MiB)."""
    b8 = _round_up(max(batch, 1), SUBLANE)
    if b8 <= SUBLANE:
        return SUBLANE
    half = _round_up((b8 + 1) // 2, SUBLANE)
    return min(1024, half)


def prepare_params(params):
    """One-time weight prep (hoisted out of the forward pass): weights cast to
    bf16 and kept at their true (in, out) shapes; biases f32, shape (1, out)."""
    prepped = []
    for w, b in params:
        prepped.append((jnp.asarray(w, jnp.bfloat16),
                        jnp.asarray(b, jnp.float32).reshape(1, -1)))
    return tuple(prepped)


@functools.partial(jax.jit, static_argnames=("activation",))
def mlp_forward(x, prepped_params, *, activation="relu"):
    """x: (B, input_dim) float32; prepped_params: output of prepare_params."""
    B, in_dim = x.shape
    (w1, b1), (w2, b2), (w3, b3) = prepped_params
    out_dim = w3.shape[1]

    bt = _pick_batch_tile(B)
    b_pad = _round_up(B, bt)
    # Only the batch dim is padded; padded rows are discarded at the end, so
    # this is exact for any activation (no reliance on zero weight columns).
    x_in = x if b_pad == B else jnp.pad(x, ((0, b_pad - B), (0, 0)))

    grid = (b_pad // bt,)
    const = lambda shape: pl.BlockSpec(shape, lambda i: (0, 0))

    flops = 2 * b_pad * (w1.shape[0] * w1.shape[1]
                         + w2.shape[0] * w2.shape[1]
                         + w3.shape[0] * w3.shape[1])
    transcendentals = (b_pad * (w1.shape[1] + w2.shape[1])
                       if activation in _TRANSCENDENTAL_ACTS else 0)
    bytes_accessed = (b_pad * in_dim * 4 + b_pad * out_dim * 4
                      + sum(w.size * 2 + b.size * 4
                            for w, b in prepped_params))

    kernel = functools.partial(_mlp_kernel, activation=activation)
    out_p = pl.pallas_call(
        kernel,
        out_shape=jax.ShapeDtypeStruct((b_pad, out_dim), jnp.float32),
        grid=grid,
        in_specs=[
            pl.BlockSpec((bt, in_dim), lambda i: (i, 0)),   # streamed x tiles
            const(w1.shape), const(b1.shape),               # resident weights
            const(w2.shape), const(b2.shape),
            const(w3.shape), const(b3.shape),
        ],
        out_specs=pl.BlockSpec((bt, out_dim), lambda i: (i, 0)),
        compiler_params=pltpu.CompilerParams(
            dimension_semantics=("parallel",)),
        cost_estimate=pl.CostEstimate(flops=flops,
                                      transcendentals=transcendentals,
                                      bytes_accessed=bytes_accessed),
    )(x_in, w1, b1, w2, b2, w3, b3)

    return out_p if b_pad == B else out_p[:B]


def init_params(key, dims):
    """Kaiming-uniform-ish init matching nn.Linear; W_i stored as (in, out)."""
    params = []
    for i in range(len(dims) - 1):
        fan_in, fan_out = dims[i], dims[i + 1]
        key, kw, kb = jax.random.split(key, 3)
        bound = 1.0 / jnp.sqrt(fan_in)
        w = jax.random.uniform(kw, (fan_in, fan_out), jnp.float32, -bound, bound)
        b = jax.random.uniform(kb, (fan_out,), jnp.float32, -bound, bound)
        params.append((w, b))
    return params


def mlp_reference(x, params, *, activation="relu"):
    """Plain-JAX reference with the same bf16-storage / f32-accumulate math
    (intentional precision choice; ~1e-2 rel. error vs. the f32 torch module)."""
    h = x.astype(jnp.bfloat16)
    n = len(params)
    for i, (w, b) in enumerate(params):
        h = jnp.dot(h, jnp.asarray(w, jnp.bfloat16),
                    preferred_element_type=jnp.float32) + jnp.asarray(b, jnp.float32)
        if i != n - 1:
            h = _act(h, activation).astype(jnp.bfloat16)
    return h


if __name__ == "__main__":
    # Module config: input_dim=16, hidden_size=[32, 32], output_dim=8, relu.
    input_dim, hidden_size, output_dim = 16, [32, 32], 8
    dims = [input_dim] + hidden_size + [output_dim]

    key = jax.random.PRNGKey(0)
    key, kp = jax.random.split(key)
    params = init_params(kp, dims)
    prepped = prepare_params(params)      # hoisted: done once, not per forward

    # batch=2: module-scale smoke test (single grid step); batch=512:
    # exercises the multi-step batch grid (2 tiles of 256) / parallel axis.
    for batch in (2, 512):
        key, kx = jax.random.split(key)
        x = jax.random.normal(kx, (batch, input_dim), jnp.float32)

        out = jax.block_until_ready(mlp_forward(x, prepped, activation="relu"))
        ref = mlp_reference(x, params, activation="relu")

        assert out.shape == (batch, output_dim)
        assert jnp.allclose(out, ref, atol=2e-3, rtol=2e-3), \
            f"mismatch vs reference at batch={batch}"

    print("KERNEL_OK")
</pallas_src>

<mosaic_0001>
module attributes {stable_mosaic.version = 11 : i64} {
  func.func @_mlp_kernel(%arg0: i32, %arg1: memref<8x16xf32, #tpu.memory_space<vmem>>, %arg2: memref<16x32xbf16, #tpu.memory_space<vmem>>, %arg3: memref<1x32xf32, #tpu.memory_space<vmem>>, %arg4: memref<32x32xbf16, #tpu.memory_space<vmem>>, %arg5: memref<1x32xf32, #tpu.memory_space<vmem>>, %arg6: memref<32x8xbf16, #tpu.memory_space<vmem>>, %arg7: memref<1x8xf32, #tpu.memory_space<vmem>>, %arg8: memref<8x8xf32, #tpu.memory_space<vmem>>) attributes {dimension_semantics = [#tpu.dimension_semantics<parallel>], iteration_bounds = array<i64: 1>, scalar_prefetch = 0 : i64, scratch_operands = 0 : i64, tpu.core_type = #tpu.core_type<tc>, window_params = [{transform_indices = @transform_0, window_bounds = array<i64: 8, 16>}, {pipeline_mode = #tpu.pipeline_mode<synchronous>, transform_indices = @transform_1, window_bounds = array<i64: 16, 32>}, {pipeline_mode = #tpu.pipeline_mode<synchronous>, transform_indices = @transform_2, window_bounds = array<i64: 1, 32>}, {pipeline_mode = #tpu.pipeline_mode<synchronous>, transform_indices = @transform_3, window_bounds = array<i64: 32, 32>}, {pipeline_mode = #tpu.pipeline_mode<synchronous>, transform_indices = @transform_4, window_bounds = array<i64: 1, 32>}, {pipeline_mode = #tpu.pipeline_mode<synchronous>, transform_indices = @transform_5, window_bounds = array<i64: 32, 8>}, {pipeline_mode = #tpu.pipeline_mode<synchronous>, transform_indices = @transform_6, window_bounds = array<i64: 1, 8>}, {transform_indices = @transform_7, window_bounds = array<i64: 8, 8>}]} {
    %c0 = arith.constant 0 : index
    %c0_0 = arith.constant 0 : index
    %0 = vector.load %arg1[%c0, %c0_0] : memref<8x16xf32, #tpu.memory_space<vmem>>, vector<8x16xf32>
    %1 = arith.truncf %0 : vector<8x16xf32> to vector<8x16xbf16>
    %c0_1 = arith.constant 0 : index
    %c0_2 = arith.constant 0 : index
    %2 = vector.load %arg2[%c0_1, %c0_2] : memref<16x32xbf16, #tpu.memory_space<vmem>>, vector<16x32xbf16>
    %cst = arith.constant dense<0.000000e+00> : vector<8x32xf32>
    %3 = tpu.matmul %1, %2, %cst {dimension_numbers = #tpu.dot_dimension_numbers<[1], [0], [0], [1], [0, 0, 1, 1], [], []>} : vector<8x16xbf16>, vector<16x32xbf16>, vector<8x32xf32> -> vector<8x32xf32>
    %c0_3 = arith.constant 0 : index
    %c0_4 = arith.constant 0 : index
    %4 = vector.load %arg3[%c0_3, %c0_4] : memref<1x32xf32, #tpu.memory_space<vmem>>, vector<1x32xf32>
    %5 = vector.broadcast %4 : vector<1x32xf32> to vector<8x32xf32>
    %6 = arith.addf %3, %5 : vector<8x32xf32>
    %cst_5 = arith.constant 0.000000e+00 : f32
    %7 = vector.broadcast %cst_5 : f32 to vector<8x32xf32>
    %8 = arith.maximumf %6, %7 : vector<8x32xf32>
    %9 = arith.truncf %8 : vector<8x32xf32> to vector<8x32xbf16>
    %c0_6 = arith.constant 0 : index
    %c0_7 = arith.constant 0 : index
    %10 = vector.load %arg4[%c0_6, %c0_7] : memref<32x32xbf16, #tpu.memory_space<vmem>>, vector<32x32xbf16>
    %cst_8 = arith.constant dense<0.000000e+00> : vector<8x32xf32>
    %11 = tpu.matmul %9, %10, %cst_8 {dimension_numbers = #tpu.dot_dimension_numbers<[1], [0], [0], [1], [0, 0, 1, 1], [], []>} : vector<8x32xbf16>, vector<32x32xbf16>, vector<8x32xf32> -> vector<8x32xf32>
    %c0_9 = arith.constant 0 : index
    %c0_10 = arith.constant 0 : index
    %12 = vector.load %arg5[%c0_9, %c0_10] : memref<1x32xf32, #tpu.memory_space<vmem>>, vector<1x32xf32>
    %13 = vector.broadcast %12 : vector<1x32xf32> to vector<8x32xf32>
    %14 = arith.addf %11, %13 : vector<8x32xf32>
    %cst_11 = arith.constant 0.000000e+00 : f32
    %15 = vector.broadcast %cst_11 : f32 to vector<8x32xf32>
    %16 = arith.maximumf %14, %15 : vector<8x32xf32>
    %17 = arith.truncf %16 : vector<8x32xf32> to vector<8x32xbf16>
    %c0_12 = arith.constant 0 : index
    %c0_13 = arith.constant 0 : index
    %18 = vector.load %arg6[%c0_12, %c0_13] : memref<32x8xbf16, #tpu.memory_space<vmem>>, vector<32x8xbf16>
    %cst_14 = arith.constant dense<0.000000e+00> : vector<8x8xf32>
    %19 = tpu.matmul %17, %18, %cst_14 {dimension_numbers = #tpu.dot_dimension_numbers<[1], [0], [0], [1], [0, 0, 1, 1], [], []>} : vector<8x32xbf16>, vector<32x8xbf16>, vector<8x8xf32> -> vector<8x8xf32>
    %c0_15 = arith.constant 0 : index
    %c0_16 = arith.constant 0 : index
    %20 = vector.load %arg7[%c0_15, %c0_16] : memref<1x8xf32, #tpu.memory_space<vmem>>, vector<1x8xf32>
    %21 = vector.broadcast %20 : vector<1x8xf32> to vector<8x8xf32>
    %22 = arith.addf %19, %21 : vector<8x8xf32>
    %c0_17 = arith.constant 0 : index
    %c0_18 = arith.constant 0 : index
    %23 = vector.load %arg8[%c0_17, %c0_18] : memref<8x8xf32, #tpu.memory_space<vmem>>, vector<8x8xf32>
    tpu.vector_store %arg8[%c0_17, %c0_18], %22 {strides = array<i32>} : memref<8x8xf32, #tpu.memory_space<vmem>>, vector<8x8xf32>,
    return
  }
  func.func @transform_0(%arg0: i32) -> (i32, i32) {
    %c0_i32 = arith.constant 0 : i32
    %c0_i32_0 = arith.constant 0 : i32
    return %arg0, %c0_i32 : i32, i32
  }
  func.func @transform_1(%arg0: i32) -> (i32, i32) {
    %c0_i32 = arith.constant 0 : i32
    %c0_i32_0 = arith.constant 0 : i32
    %c0_i32_1 = arith.constant 0 : i32
    return %c0_i32, %c0_i32_0 : i32, i32
  }
  func.func @transform_2(%arg0: i32) -> (i32, i32) {
    %c0_i32 = arith.constant 0 : i32
    %c0_i32_0 = arith.constant 0 : i32
    %c0_i32_1 = arith.constant 0 : i32
    return %c0_i32, %c0_i32_0 : i32, i32
  }
  func.func @transform_3(%arg0: i32) -> (i32, i32) {
    %c0_i32 = arith.constant 0 : i32
    %c0_i32_0 = arith.constant 0 : i32
    %c0_i32_1 = arith.constant 0 : i32
    return %c0_i32, %c0_i32_0 : i32, i32
  }
  func.func @transform_4(%arg0: i32) -> (i32, i32) {
    %c0_i32 = arith.constant 0 : i32
    %c0_i32_0 = arith.constant 0 : i32
    %c0_i32_1 = arith.constant 0 : i32
    return %c0_i32, %c0_i32_0 : i32, i32
  }
  func.func @transform_5(%arg0: i32) -> (i32, i32) {
    %c0_i32 = arith.constant 0 : i32
    %c0_i32_0 = arith.constant 0 : i32
    %c0_i32_1 = arith.constant 0 : i32
    return %c0_i32, %c0_i32_0 : i32, i32
  }
  func.func @transform_6(%arg0: i32) -> (i32, i32) {
    %c0_i32 = arith.constant 0 : i32
    %c0_i32_0 = arith.constant 0 : i32
    %c0_i32_1 = arith.constant 0 : i32
    return %c0_i32, %c0_i32_0 : i32, i32
  }
  func.func @transform_7(%arg0: i32) -> (i32, i32) {
    %c0_i32 = arith.constant 0 : i32
    %c0_i32_0 = arith.constant 0 : i32
    return %arg0, %c0_i32 : i32, i32
  }
}

</mosaic_0001>

<bundles_post_ra>
// kernel: mlp_forward.1
= control target key start
LH: loop header
LB: loop body
LE: loop exit
PB: predicated region body
PF: predicated region fallthrough
CT: control target
= control target key end

     0   :  { %v279_v0 = vmov 0.0   ;;  %vm280_vm0 = vmmov 0   ;;  %vm44_vm1 = vcmask 130048   ;;  %vm113_vm2 = vcmask 261120   ;;  %s351_s1 = inlined_call_operand.vmem [shape: bf16[16,32], index: 1, kind: input, shape index: {}]   ;;  %s352_s0 = inlined_call_operand.vmem [shape: f32[8,16], index: 0, kind: input, shape index: {}]   ;;  %s353_s3 = inlined_call_operand.vmem [shape: bf16[32,32], index: 3, kind: input, shape index: {}]   ;;  %s354_s5 = inlined_call_operand.vmem [shape: bf16[32,8], index: 5, kind: input, shape index: {}]   ;;  %s355_s2 = inlined_call_operand.vmem [shape: f32[1,32], index: 2, kind: input, shape index: {}]   ;;  %s356_s4 = inlined_call_operand.vmem [shape: f32[1,32], index: 4, kind: input, shape index: {}]   ;;  %s357_s6 = inlined_call_operand.vmem [shape: f32[1,8], index: 6, kind: input, shape index: {}]   ;;  %s358_s7 = inlined_call_operand.vmem [shape: f32[8,8], index: 7, kind: output, shape index: {}]  }
   0x1   :  { %250 = vmatprep.subr.bf16.mxu0 %v279_v0  ;;  %v274_v1 = vld [vmem:[%s351_s1] sm:$0xff]   ;;  %252 = vmatprep.mubr.msk.bf16.mxu0 %vm280_vm0, %v279_v0  ;;  %v276_v5 = vld [vmem:[%s353_s3 + $0x8] sm:$0xff]   ;;  %vm225_vm3 = vcmask 64512  }
   0x2   :  { %v27_v2 = vld [vmem:[%s352_s0] sm:$0xff]  ;;  %256 = vmatprep.subr.bf16.mxu1 %v279_v0  ;;  %260 = vmatprep.mubr.msk.bf16.mxu1 %vm280_vm0, %v279_v0  ;;  %v278_v15 = vld [vmem:[%s354_s5 + $0x8] sm:$0xff]  }
   0x3   :  { %251 = vmatpush3.bf16.msra.mxu0 %v274_v1  ;;  %v28_v3 = vpack.c.bf16 %v27_v2, %v27_v2  ;;  %v275_v4 = vld [vmem:[%s353_s3] sm:$0xff]  }
   0x4   :  { %264 = vmatprep.subr.bf16.mxu0 %v279_v0  ;;  %257 = vmatpush3.bf16.msra.mxu1 %v275_v4  ;;  %v277_v6 = vld [vmem:[%s354_s5] sm:$0xff]  }
   0x5   :  { %258 = vmatprep.subr.bf16.mxu1 %v279_v0  ;;  %v231_v7 = vld [vmem:[%s355_s2] ss:$0 sm:$0xff] }
   0x6   :  { %253 = vmatmul.mubr.msk.bf16.vlgmr.msra.gmra.mrb[0].mxu0 %vm44_vm1, %v28_v3  ;;  %v234_v16 = vld [vmem:[%s356_s4] ss:$0 sm:$0xff] }
   0x7   :  { %268 = vmatprep.mubr.msk.bf16.mxu0 %vm280_vm0, %v279_v0  ;;  %265 = vmatpush3.bf16.msra.mxu0 %v277_v6  ;;  %v238_v24 = vld [vmem:[%s357_s6] ss:$0 sm:$0xff] }
   0x8   :  { %259 = vmatpush3.bf16.msra.mxu1 %v276_v5  ;;  %266 = vmatprep.subr.bf16.mxu0 %v279_v0 }
   0xb   :  { %267 = vmatpush3.bf16.msra.mxu0 %v278_v15 }
  0xd9   :  { %v82_v8 = vpop.f32.mrb[0].mxu0 }
  0xda   :  { %v83_v9 = vadd.f32 %v231_v7, %v82_v8  ;;  %v254_v10 = vpop.f32.mrb[1].mxu0 }
  0xdb   :  { %v85_v11 = vpop.f32.mrb[2].mxu0 }
  0xdc   :  { %v88_v12 = vmax.f32 %v83_v9, 0.0  ;;  %v255_v13 = vpop.f32.mrb[3].mxu0 }
  0xde   :  { %v89_v14 = vpack.c.bf16 %v88_v12, %v88_v12 }
  0xe0   :  { %261 = vmatmul.mubr.msk.bf16.vlgmr.msra.gmra.mrb[0].mxu1 %vm113_vm2, %v89_v14 }
 0x1b3   :  { %v151_v17 = vpop.f32.mrb[0].mxu1 }
 0x1b4   :  { %v152_v18 = vadd.f32 %v234_v16, %v151_v17  ;;  %v262_v19 = vpop.f32.mrb[1].mxu1 }
 0x1b5   :  { %v154_v20 = vpop.f32.mrb[2].mxu1 }
 0x1b6   :  { %v157_v21 = vmax.f32 %v152_v18, 0.0  ;;  %v263_v22 = vpop.f32.mrb[3].mxu1 }
 0x1b8   :  { %v158_v23 = vpack.c.bf16 %v157_v21, %v157_v21 }
 0x1ba   :  { %269 = vmatmul.mubr.msk.bf16.vlgmr.msra.gmra.mrb[4].mxu0 %vm113_vm2, %v158_v23 }
 0x28d   :  { %v219_v25 = vpop.f32.mrb[4].mxu0 }
 0x28e   :  { %v220_v26 = vadd.f32 %v238_v24, %v219_v25  ;;  %v270_v27 = vpop.f32.mrb[5].mxu0 }
 0x28f   :  { %v222_v28 = vpop.f32.mrb[6].mxu0 }
 0x290   :  { %226 = vst.msk [vmem:[%s358_s7] sm:$0xff] %vm225_vm3, %v220_v26  ;;  %v271_v29 = vpop.f32.mrb[7].mxu0 }

</bundles_post_ra>
